<compile_context>
chip_gen: v5e
topology: v5e:2x2
jax: 0.10.0
libtpu: 0.0.40
codegen_flags: <defaults>
</compile_context>

<pallas_src>
import jax
import jax.numpy as jnp
from jax.experimental import pallas as pl
from jax.experimental.pallas import tpu as pltpu

EPS = 1e-5          # nn.BatchNorm1d default
NEG_SLOPE = 0.01    # nn.LeakyReLU() default


def _dot(a, b):
    """MXU dot with f32 accumulation (exact f32 / native bf16 operands)."""
    return jnp.dot(a, b, preferred_element_type=jnp.float32,
                   precision=jax.lax.Precision.HIGHEST)


def _pick_tile(n, cap):
    """Largest size <= cap that divides n and is a multiple of 8 (sublane), else n."""
    if n <= cap:
        return n
    for d in range(cap - cap % 8, 7, -8):
        if n % d == 0:
            return d
    return n


# --------------------- pass 1: conv1 -> per-tile BatchNorm partials ---------------------
def _conv1_stats_kernel(x_ref, xh_ref, w1_ref, b1_ref, s1_ref, ssd_ref):
    """One (batch, L-tile) block.

    x_ref  : (TL, Cin)      input rows of this tile               (compute dtype)
    xh_ref : (2, Cin)       halo rows x[tile_start-1], x[tile_end] (edge-replicated)
    w1_ref : (3, Cin, Cout) conv1 taps
    b1_ref : (1, Cout)      conv1 bias (f32)
    s1_ref : (1, Cout)      sum_l h[l]                             (f32)
    ssd_ref: (1, Cout)      sum_l (h[l] - tile_mean)^2             (f32)
    """
    x = x_ref[...]
    n = x.shape[0]
    x_m1 = jnp.concatenate([xh_ref[0:1, :], x[:n - 1, :]], axis=0)   # x[l-1]
    x_p1 = jnp.concatenate([x[1:, :], xh_ref[1:2, :]], axis=0)       # x[l+1]

    h = _dot(x_m1, w1_ref[0]) + _dot(x, w1_ref[1]) + _dot(x_p1, w1_ref[2]) + b1_ref[...]

    s = jnp.sum(h, axis=0, keepdims=True)
    d = h - s * (1.0 / n)
    s1_ref[...] = s
    ssd_ref[...] = jnp.sum(d * d, axis=0, keepdims=True)


# ------ pass 2: recompute conv1 -> BN -> LeakyReLU -> conv2(+AvgPool) -> +shortcut ------
def _fused_main_kernel(x2_ref, xh_ref, w1_ref, aff_ref, w2p_ref, ws_ref, out_ref):
    """One (batch, output-tile) block; even/odd input rows packed on the lane axis.

    x2_ref : (TM, 2*Cin)      [x[2m] | x[2m+1]]                    (compute dtype)
    xh_ref : (4, Cin)         x[2tTM-2], x[2tTM-1], x[2(t+1)TM], x[2(t+1)TM+1]
    w1_ref : (3, Cin, Cout)   conv1 taps
    aff_ref: (4, Cout) f32    rows: b1, bn_scale, bn_shift, (b2+bs)
    w2p_ref: (4, Cout, Cout)  conv2 taps pre-combined with the 0.5 avg-pool
    ws_ref : (Cin, Cout)      1x1 shortcut conv
    out_ref: (TM, Cout) f32
    """
    tm, _ = out_ref.shape
    cin = ws_ref.shape[0]
    cd = x2_ref.dtype

    x2 = x2_ref[...]
    xe = x2[:, :cin]            # x[2m]
    xo = x2[:, cin:]            # x[2m+1]

    b1 = aff_ref[0:1, :]
    scale = aff_ref[1:2, :]
    shift = aff_ref[2:3, :]
    bias = aff_ref[3:4, :]

    w0, w1, w2 = w1_ref[0], w1_ref[1], w1_ref[2]

    # conv1 (recomputed, per-tap accumulated dots) for even / odd rows
    xo_prev = jnp.concatenate([xh_ref[1:2, :], xo[:tm - 1, :]], axis=0)   # x[2m-1]
    xe_next = jnp.concatenate([xe[1:, :], xh_ref[2:3, :]], axis=0)        # x[2m+2]
    he = _dot(xo_prev, w0) + _dot(xe, w1) + _dot(xo, w2) + b1             # h[2m]
    ho = _dot(xe, w0) + _dot(xo, w1) + _dot(xe_next, w2) + b1             # h[2m+1]

    def bn_act(h):
        y = h * scale + shift
        return jnp.where(y > 0, y, NEG_SLOPE * y)

    ye = bn_act(he)             # y[2m]    (f32)
    yo = bn_act(ho)             # y[2m+1]  (f32)

    # y rows just outside this tile, needed by conv2's +-1 taps.
    t = pl.program_id(1)
    h_left = _dot(xh_ref[0:1, :], w0) + _dot(xh_ref[1:2, :], w1) + _dot(xe[0:1, :], w2) + b1
    y_left = bn_act(h_left)                                   # y[2t*TM - 1]
    y_left = jnp.where(t == 0, ye[0:1, :], y_left)            # global edge: y[-1] = y[0]

    h_right = (_dot(xo[tm - 1:tm, :], w0) + _dot(xh_ref[2:3, :], w1)
               + _dot(xh_ref[3:4, :], w2) + b1)
    y_right = bn_act(h_right)                                 # y[2(t+1)*TM]
    y_right = jnp.where(t == pl.num_programs(1) - 1,
                        yo[tm - 1:tm, :], y_right)            # global edge: y[L] = y[L-1]

    yo_prev = jnp.concatenate([y_left, yo[:tm - 1, :]], axis=0)   # y[2m-1]
    ye_next = jnp.concatenate([ye[1:, :], y_right], axis=0)       # y[2m+2]

    # conv2 with AvgPool1d(2,2) folded into the 4 pre-combined taps
    acc = _dot(yo_prev.astype(cd), w2p_ref[0])
    acc += _dot(ye.astype(cd), w2p_ref[1])
    acc += _dot(yo.astype(cd), w2p_ref[2])
    acc += _dot(ye_next.astype(cd), w2p_ref[3])

    # shortcut: AvgPool1d(2,2) (VPU add of the lane halves) -> 1x1 conv
    x_pool = (0.5 * (xe.astype(jnp.float32) + xo.astype(jnp.float32))).astype(cd)
    acc += _dot(x_pool, ws_ref[...])

    out_ref[...] = (acc + bias).astype(out_ref.dtype)


def res_block_encoder_optimized(x_ncl, params, *, compute_dtype=jnp.float32,
                                tile_rows=None, tile_out_rows=None):
    """x_ncl: (B, C_in, L) float32 (PyTorch NCL). Returns (B, C_out, L//2) float32.

    tile_rows / tile_out_rows tile the length axis of pass 1 / pass 2 (per-TPU-gen
    knobs: halve for v7x's 64 MiB VMEM, grow for v5e/v6e's 128 MiB).
    compute_dtype=jnp.bfloat16 feeds the MXU bf16 operands; stats, BN affine and
    all accumulation stay f32.
    """
    B, C_in, L = x_ncl.shape
    assert L % 2 == 0, "AvgPool1d(2,2) here assumes even length"
    C_out = params["w1"].shape[0]
    M = L // 2
    f32 = jnp.float32
    cd = compute_dtype

    TL = tile_rows if tile_rows is not None else _pick_tile(L, 2048)
    TM = tile_out_rows if tile_out_rows is not None else _pick_tile(M, 1024)
    assert L % TL == 0 and M % TM == 0
    T1, T2 = L // TL, M // TM

    # ---- layout glue: one NLC transpose; channels stay unpadded (full-dim lane blocks) ----
    x_nlc = jnp.transpose(x_ncl, (0, 2, 1)).astype(cd)        # (B, L, C_in)
    x2 = x_nlc.reshape(B, M, 2 * C_in)                        # even/odd lane-packed (free reshape)

    # tiny per-tile halo rows (sequence-edge replication baked in by the clamp)
    t1 = jnp.arange(T1)
    idx1 = jnp.stack([jnp.maximum(t1 * TL - 1, 0),
                      jnp.minimum((t1 + 1) * TL, L - 1)], axis=1)
    xh1 = x_nlc[:, idx1, :]                                   # (B, T1, 2, C_in)

    base = jnp.arange(T2) * (2 * TM)
    idx2 = jnp.clip(jnp.stack([base - 2, base - 1, base + 2 * TM, base + 2 * TM + 1],
                              axis=1), 0, L - 1)
    xh2 = x_nlc[:, idx2, :]                                   # (B, T2, 4, C_in)

    # ---- parameter packing ----
    w1_taps = jnp.transpose(params["w1"].astype(f32), (2, 1, 0)).astype(cd)  # (3,Cin,Cout)
    b1 = params["b1"].reshape(1, C_out).astype(f32)
    v = jnp.transpose(params["w2"].astype(f32), (2, 1, 0))                   # (3,Cout,Cout)
    # AvgPool1d(2,2) folded into conv2:
    # 0.5*(z[2m]+z[2m+1]) = y[2m-1](.5V0)+y[2m](.5(V0+V1))+y[2m+1](.5(V1+V2))+y[2m+2](.5V2)+b2
    w2p = (0.5 * jnp.stack([v[0], v[0] + v[1], v[1] + v[2], v[2]], axis=0)).astype(cd)
    ws = params["ws"][:, :, 0].T.astype(cd)                                  # (Cin,Cout)
    bias_out = (params["b2"] + params["bs"]).astype(f32)                     # b2 + bs

    cparams = pltpu.CompilerParams(dimension_semantics=("parallel", "parallel"),
                                   vmem_limit_bytes=48 * 1024 * 1024)

    # ---- pass 1: conv1 -> per-tile BN partials (conv1 activation never hits HBM) ----
    s1, ssd = pl.pallas_call(
        _conv1_stats_kernel,
        grid=(B, T1),
        in_specs=[pl.BlockSpec((None, TL, C_in), lambda b, t: (b, t, 0)),
                  pl.BlockSpec((None, None, 2, C_in), lambda b, t: (b, t, 0, 0)),
                  pl.BlockSpec((3, C_in, C_out), lambda b, t: (0, 0, 0)),
                  pl.BlockSpec((1, C_out), lambda b, t: (0, 0))],
        out_specs=(pl.BlockSpec((None, None, 1, C_out), lambda b, t: (b, t, 0, 0)),
                   pl.BlockSpec((None, None, 1, C_out), lambda b, t: (b, t, 0, 0))),
        out_shape=(jax.ShapeDtypeStruct((B, T1, 1, C_out), f32),
                   jax.ShapeDtypeStruct((B, T1, 1, C_out), f32)),
        compiler_params=cparams,
    )(x_nlc, xh1, w1_taps, b1)

    # ---- BatchNorm1d training-mode stats: stable Welford-style combine (f32 glue) ----
    n_total = float(B * L)
    mean = jnp.sum(s1, axis=(0, 1, 2)) / n_total                 # (Cout,)
    mu_t = s1[:, :, 0, :] / float(TL)                            # per-tile means
    var = (jnp.sum(ssd, axis=(0, 1, 2))
           + float(TL) * jnp.sum((mu_t - mean) ** 2, axis=(0, 1))) / n_total
    inv_std = jax.lax.rsqrt(var + EPS)
    scale = params["gamma"].astype(f32) * inv_std
    shift = params["beta"].astype(f32) - mean * scale
    aff = jnp.stack([b1[0], scale, shift, bias_out], axis=0)     # (4, Cout) f32

    # ---- pass 2: recompute conv1 -> BN -> LeakyReLU -> conv2(+pool) -> +shortcut ----
    out_nlc = pl.pallas_call(
        _fused_main_kernel,
        grid=(B, T2),
        in_specs=[pl.BlockSpec((None, TM, 2 * C_in), lambda b, t: (b, t, 0)),
                  pl.BlockSpec((None, None, 4, C_in), lambda b, t: (b, t, 0, 0)),
                  pl.BlockSpec((3, C_in, C_out), lambda b, t: (0, 0, 0)),
                  pl.BlockSpec((4, C_out), lambda b, t: (0, 0)),
                  pl.BlockSpec((4, C_out, C_out), lambda b, t: (0, 0, 0)),
                  pl.BlockSpec((C_in, C_out), lambda b, t: (0, 0))],
        out_specs=pl.BlockSpec((None, TM, C_out), lambda b, t: (b, t, 0)),
        out_shape=jax.ShapeDtypeStruct((B, M, C_out), f32),
        compiler_params=cparams,
    )(x2, xh2, w1_taps, aff, w2p, ws)

    return jnp.transpose(out_nlc, (0, 2, 1))                     # (B, C_out, M), PyTorch NCL


# ----------------------------- pure-JAX reference -----------------------------
def _reference(x, params):
    B, C_in, L = x.shape
    C_out = params["w1"].shape[0]

    def rep_pad(t, p):
        left = jnp.repeat(t[:, :, :1], p, axis=2)
        right = jnp.repeat(t[:, :, -1:], p, axis=2)
        return jnp.concatenate([left, t, right], axis=2)

    def conv1d(t, w, b):
        out = jax.lax.conv_general_dilated(
            t, w, window_strides=(1,), padding="VALID",
            dimension_numbers=("NCH", "OIH", "NCH"),
            precision=jax.lax.Precision.HIGHEST)
        return out + b[None, :, None]

    h = conv1d(rep_pad(x, 1), params["w1"], params["b1"])
    mean = jnp.mean(h, axis=(0, 2), keepdims=True)
    var = jnp.mean((h - mean) ** 2, axis=(0, 2), keepdims=True)   # biased (train mode)
    y = params["gamma"][None, :, None] * (h - mean) / jnp.sqrt(var + EPS) \
        + params["beta"][None, :, None]
    y = jnp.where(y > 0, y, NEG_SLOPE * y)
    z = conv1d(rep_pad(y, 1), params["w2"], params["b2"])
    z_pool = z.reshape(B, C_out, L // 2, 2).mean(-1)
    x_pool = x.reshape(B, C_in, L // 2, 2).mean(-1)
    sc = conv1d(x_pool, params["ws"], params["bs"])
    return z_pool + sc


if __name__ == "__main__":
    B, C_in, C_out, L = 2, 4, 8, 32
    key = jax.random.PRNGKey(0)
    ks = jax.random.split(key, 7)

    x = jax.random.normal(ks[0], (B, C_in, L), jnp.float32)
    params = {
        "w1": 0.2 * jax.random.normal(ks[1], (C_out, C_in, 3), jnp.float32),
        "b1": 0.1 * jax.random.normal(ks[2], (C_out,), jnp.float32),
        "w2": 0.2 * jax.random.normal(ks[3], (C_out, C_out, 3), jnp.float32),
        "b2": 0.1 * jax.random.normal(ks[4], (C_out,), jnp.float32),
        "ws": 0.2 * jax.random.normal(ks[5], (C_out, C_in, 1), jnp.float32),
        "bs": 0.1 * jax.random.normal(ks[6], (C_out,), jnp.float32),
        "gamma": jnp.ones((C_out,), jnp.float32),    # BatchNorm1d default init
        "beta": jnp.zeros((C_out,), jnp.float32),
    }

    ref = _reference(x, params)

    # f32 path; tile sizes chosen so both passes exercise the multi-tile halo code.
    out = res_block_encoder_optimized(x, params, tile_rows=16, tile_out_rows=8)
    out = jax.block_until_ready(out)
    assert out.shape == (B, C_out, L // 2), out.shape
    assert jnp.allclose(out, ref, atol=1e-4, rtol=1e-4), \
        float(jnp.max(jnp.abs(out - ref)))

    # bf16 MXU-operand path (f32 accumulation / stats) -- bf16-level tolerance.
    out_bf16 = res_block_encoder_optimized(x, params, compute_dtype=jnp.bfloat16,
                                           tile_rows=16, tile_out_rows=8)
    out_bf16 = jax.block_until_ready(out_bf16)
    assert jnp.allclose(out_bf16, ref, atol=1e-1, rtol=1e-1), \
        float(jnp.max(jnp.abs(out_bf16 - ref)))

    print("KERNEL_OK")
</pallas_src>

<mosaic_0001>
module attributes {stable_mosaic.version = 11 : i64} {
  func.func @_conv1_stats_kernel(%arg0: i32, %arg1: i32, %arg2: memref<1x16x4xf32, #tpu.memory_space<vmem>>, %arg3: memref<1x1x2x4xf32, #tpu.memory_space<vmem>>, %arg4: memref<3x4x8xf32, #tpu.memory_space<vmem>>, %arg5: memref<1x8xf32, #tpu.memory_space<vmem>>, %arg6: memref<1x1x1x8xf32, #tpu.memory_space<vmem>>, %arg7: memref<1x1x1x8xf32, #tpu.memory_space<vmem>>) attributes {dimension_semantics = [#tpu.dimension_semantics<parallel>, #tpu.dimension_semantics<parallel>], iteration_bounds = array<i64: 2, 2>, scalar_prefetch = 0 : i64, scratch_operands = 0 : i64, tpu.core_type = #tpu.core_type<tc>, window_params = [{transform_indices = @transform_0, window_bounds = array<i64: 1, 16, 4>}, {transform_indices = @transform_1, window_bounds = array<i64: 1, 1, 2, 4>}, {pipeline_mode = #tpu.pipeline_mode<synchronous>, transform_indices = @transform_2, window_bounds = array<i64: 3, 4, 8>}, {pipeline_mode = #tpu.pipeline_mode<synchronous>, transform_indices = @transform_3, window_bounds = array<i64: 1, 8>}, {transform_indices = @transform_4, window_bounds = array<i64: 1, 1, 1, 8>}, {transform_indices = @transform_5, window_bounds = array<i64: 1, 1, 1, 8>}]} {
    %c0 = arith.constant 0 : index
    %c0_0 = arith.constant 0 : index
    %c0_1 = arith.constant 0 : index
    %0 = vector.load %arg2[%c0, %c0_0, %c0_1] : memref<1x16x4xf32, #tpu.memory_space<vmem>>, vector<1x16x4xf32>
    %1 = vector.shape_cast %0 : vector<1x16x4xf32> to vector<16x4xf32>
    %c0_2 = arith.constant 0 : index
    %c0_3 = arith.constant 0 : index
    %c0_4 = arith.constant 0 : index
    %c0_5 = arith.constant 0 : index
    %2 = vector.load %arg3[%c0_2, %c0_3, %c0_4, %c0_5] : memref<1x1x2x4xf32, #tpu.memory_space<vmem>>, vector<1x1x1x4xf32>
    %3 = vector.shape_cast %2 : vector<1x1x1x4xf32> to vector<1x4xf32>
    %4 = vector.extract_strided_slice %1 {offsets = [0, 0], sizes = [15, 4], strides = [1, 1]} : vector<16x4xf32> to vector<15x4xf32>
    %5 = tpu.concatenate %3, %4 in 0 : vector<1x4xf32>, vector<15x4xf32> -> vector<16x4xf32>
    %6 = vector.extract_strided_slice %1 {offsets = [1, 0], sizes = [15, 4], strides = [1, 1]} : vector<16x4xf32> to vector<15x4xf32>
    %c0_6 = arith.constant 0 : index
    %c0_7 = arith.constant 0 : index
    %c1 = arith.constant 1 : index
    %c0_8 = arith.constant 0 : index
    %7 = vector.load %arg3[%c0_6, %c0_7, %c1, %c0_8] : memref<1x1x2x4xf32, #tpu.memory_space<vmem>>, vector<1x1x1x4xf32>
    %8 = vector.shape_cast %7 : vector<1x1x1x4xf32> to vector<1x4xf32>
    %9 = tpu.concatenate %6, %8 in 0 : vector<15x4xf32>, vector<1x4xf32> -> vector<16x4xf32>
    %c0_9 = arith.constant 0 : index
    %c0_10 = arith.constant 0 : index
    %c0_11 = arith.constant 0 : index
    %10 = vector.load %arg4[%c0_9, %c0_10, %c0_11] : memref<3x4x8xf32, #tpu.memory_space<vmem>>, vector<1x4x8xf32>
    %11 = vector.shape_cast %10 : vector<1x4x8xf32> to vector<4x8xf32>
    %cst = arith.constant dense<0.000000e+00> : vector<16x8xf32>
    %12 = tpu.matmul %5, %11, %cst {dimension_numbers = #tpu.dot_dimension_numbers<[1], [0], [0], [1], [0, 0, 1, 1], [], []>, precision = #tpu.contract_precision<fp32>} : vector<16x4xf32>, vector<4x8xf32>, vector<16x8xf32> -> vector<16x8xf32>
    %c1_12 = arith.constant 1 : index
    %c0_13 = arith.constant 0 : index
    %c0_14 = arith.constant 0 : index
    %13 = vector.load %arg4[%c1_12, %c0_13, %c0_14] : memref<3x4x8xf32, #tpu.memory_space<vmem>>, vector<1x4x8xf32>
    %14 = vector.shape_cast %13 : vector<1x4x8xf32> to vector<4x8xf32>
    %cst_15 = arith.constant dense<0.000000e+00> : vector<16x8xf32>
    %15 = tpu.matmul %1, %14, %cst_15 {dimension_numbers = #tpu.dot_dimension_numbers<[1], [0], [0], [1], [0, 0, 1, 1], [], []>, precision = #tpu.contract_precision<fp32>} : vector<16x4xf32>, vector<4x8xf32>, vector<16x8xf32> -> vector<16x8xf32>
    %16 = arith.addf %12, %15 : vector<16x8xf32>
    %c2 = arith.constant 2 : index
    %c0_16 = arith.constant 0 : index
    %c0_17 = arith.constant 0 : index
    %17 = vector.load %arg4[%c2, %c0_16, %c0_17] : memref<3x4x8xf32, #tpu.memory_space<vmem>>, vector<1x4x8xf32>
    %18 = vector.shape_cast %17 : vector<1x4x8xf32> to vector<4x8xf32>
    %cst_18 = arith.constant dense<0.000000e+00> : vector<16x8xf32>
    %19 = tpu.matmul %9, %18, %cst_18 {dimension_numbers = #tpu.dot_dimension_numbers<[1], [0], [0], [1], [0, 0, 1, 1], [], []>, precision = #tpu.contract_precision<fp32>} : vector<16x4xf32>, vector<4x8xf32>, vector<16x8xf32> -> vector<16x8xf32>
    %20 = arith.addf %16, %19 : vector<16x8xf32>
    %c0_19 = arith.constant 0 : index
    %c0_20 = arith.constant 0 : index
    %21 = vector.load %arg5[%c0_19, %c0_20] : memref<1x8xf32, #tpu.memory_space<vmem>>, vector<1x8xf32>
    %22 = vector.broadcast %21 : vector<1x8xf32> to vector<16x8xf32>
    %23 = arith.addf %20, %22 : vector<16x8xf32>
    %cst_21 = arith.constant dense<0.000000e+00> : vector<8xf32>
    %24 = vector.multi_reduction <add>, %23, %cst_21 [0] : vector<16x8xf32> to vector<8xf32>
    %25 = vector.shape_cast %24 : vector<8xf32> to vector<1x8xf32>
    %cst_22 = arith.constant 6.250000e-02 : f32
    %26 = vector.broadcast %cst_22 : f32 to vector<1x8xf32>
    %27 = arith.mulf %25, %26 : vector<1x8xf32>
    %28 = vector.broadcast %27 : vector<1x8xf32> to vector<16x8xf32>
    %29 = arith.subf %23, %28 : vector<16x8xf32>
    %c0_23 = arith.constant 0 : index
    %c0_24 = arith.constant 0 : index
    %c0_25 = arith.constant 0 : index
    %c0_26 = arith.constant 0 : index
    %30 = vector.load %arg6[%c0_23, %c0_24, %c0_25, %c0_26] : memref<1x1x1x8xf32, #tpu.memory_space<vmem>>, vector<1x1x1x8xf32>
    %31 = vector.shape_cast %30 : vector<1x1x1x8xf32> to vector<1x8xf32>
    %32 = vector.shape_cast %25 : vector<1x8xf32> to vector<1x1x1x8xf32>
    tpu.vector_store %arg6[%c0_23, %c0_24, %c0_25, %c0_26], %32 {strides = array<i32>} : memref<1x1x1x8xf32, #tpu.memory_space<vmem>>, vector<1x1x1x8xf32>,
    %33 = arith.mulf %29, %29 : vector<16x8xf32>
    %cst_27 = arith.constant dense<0.000000e+00> : vector<8xf32>
    %34 = vector.multi_reduction <add>, %33, %cst_27 [0] : vector<16x8xf32> to vector<8xf32>
    %35 = vector.shape_cast %34 : vector<8xf32> to vector<1x8xf32>
    %c0_28 = arith.constant 0 : index
    %c0_29 = arith.constant 0 : index
    %c0_30 = arith.constant 0 : index
    %c0_31 = arith.constant 0 : index
    %36 = vector.load %arg7[%c0_28, %c0_29, %c0_30, %c0_31] : memref<1x1x1x8xf32, #tpu.memory_space<vmem>>, vector<1x1x1x8xf32>
    %37 = vector.shape_cast %36 : vector<1x1x1x8xf32> to vector<1x8xf32>
    %38 = vector.shape_cast %35 : vector<1x8xf32> to vector<1x1x1x8xf32>
    tpu.vector_store %arg7[%c0_28, %c0_29, %c0_30, %c0_31], %38 {strides = array<i32>} : memref<1x1x1x8xf32, #tpu.memory_space<vmem>>, vector<1x1x1x8xf32>,
    return
  }
  func.func @transform_0(%arg0: i32, %arg1: i32) -> (i32, i32, i32) {
    %c0_i32 = arith.constant 0 : i32
    %c0_i32_0 = arith.constant 0 : i32
    return %arg0, %arg1, %c0_i32 : i32, i32, i32
  }
  func.func @transform_1(%arg0: i32, %arg1: i32) -> (i32, i32, i32, i32) {
    %c0_i32 = arith.constant 0 : i32
    %c0_i32_0 = arith.constant 0 : i32
    %c0_i32_1 = arith.constant 0 : i32
    return %arg0, %arg1, %c0_i32, %c0_i32_0 : i32, i32, i32, i32
  }
  func.func @transform_2(%arg0: i32, %arg1: i32) -> (i32, i32, i32) {
    %c0_i32 = arith.constant 0 : i32
    %c0_i32_0 = arith.constant 0 : i32
    %c0_i32_1 = arith.constant 0 : i32
    %c0_i32_2 = arith.constant 0 : i32
    return %c0_i32, %c0_i32_0, %c0_i32_1 : i32, i32, i32
  }
  func.func @transform_3(%arg0: i32, %arg1: i32) -> (i32, i32) {
    %c0_i32 = arith.constant 0 : i32
    %c0_i32_0 = arith.constant 0 : i32
    %c0_i32_1 = arith.constant 0 : i32
    return %c0_i32, %c0_i32_0 : i32, i32
  }
  func.func @transform_4(%arg0: i32, %arg1: i32) -> (i32, i32, i32, i32) {
    %c0_i32 = arith.constant 0 : i32
    %c0_i32_0 = arith.constant 0 : i32
    %c0_i32_1 = arith.constant 0 : i32
    return %arg0, %arg1, %c0_i32, %c0_i32_0 : i32, i32, i32, i32
  }
  func.func @transform_5(%arg0: i32, %arg1: i32) -> (i32, i32, i32, i32) {
    %c0_i32 = arith.constant 0 : i32
    %c0_i32_0 = arith.constant 0 : i32
    %c0_i32_1 = arith.constant 0 : i32
    return %arg0, %arg1, %c0_i32, %c0_i32_0 : i32, i32, i32, i32
  }
}

</mosaic_0001>

<bundles_post_ra>
// kernel: tpu_custom_call.1
= control target key start
LH: loop header
LB: loop body
LE: loop exit
PB: predicated region body
PF: predicated region fallthrough
CT: control target
= control target key end

     0   :  { %11 = vsyncpa [#allocation3], 0  ;;  %s1521_s0 = inlined_call_operand.vmem [shape: f32[2,32,4], index: 0, kind: input, shape index: {}]   ;;  %s1522_s1 = inlined_call_operand.vmem [shape: f32[2,2,2,4], index: 1, kind: input, shape index: {}]   ;;  %s1523_s2 = inlined_call_operand.vmem [shape: f32[3,4,8], index: 2, kind: input, shape index: {}]   ;;  %s1524_s3 = inlined_call_operand.vmem [shape: f32[1,8], index: 3, kind: input, shape index: {}]   ;;  %s1525_s4 = inlined_call_operand.hbm [shape: f32[2,2,1,8], index: 4, kind: output, shape index: {0}]   ;;  %s1526_s5 = inlined_call_operand.hbm [shape: f32[2,2,1,8], index: 5, kind: output, shape index: {1}]  }
   0x1   :  { %13 = vsyncpa [#allocation3 + $0x1], 0 }
   0x2   :  { %14 = vsyncpa [#allocation5], 0 }
   0x3   :  { %16 = vsyncpa [#allocation5 + $0x1], 0  ;;  %s1321_s18 = smov 0   ;;  %s1323_s19 = smov 0  }
   0x4   :  { %s1325_s20 = smov 0   ;;  %s1327_s21 = smov 0  }
   0x5   :  { %s1329_s22 = smov 0   ;;  %s1331_s23 = smov 0  }
   0x6   :  { %s1333_s24 = smov 0   ;;  %s1335_s25 = smov 0  }
   0x7 LB: > { %s1068_s26 = sadd.s32 4294967295, %s1289_s25   ;;  %s1069_s27 = sadd.s32 4294967294, %s1289_s25   ;;  %s1289_s25 = sphi %s1335_s25, %s22_s25   ;;  %s1285_s24 = sphi %s1333_s24, %s1535_s24   ;;  %s1281_s23 = sphi %s1331_s23, %s1534_s23   ;;  %s1277_s22 = sphi %s1329_s22, %s1533_s22   ;;  %s1273_s21 = sphi %s1327_s21, %s1532_s21   ;;  %s1269_s20 = sphi %s1325_s20, %s1531_s20   ;;  %s1265_s19 = sphi %s1323_s19, %s1530_s19   ;;  %s1261_s18 = sphi %s1321_s18, %s1529_s18  }
   0x8   : > { %s31_s28 = sadd.s32 1, %s1281_s23  ;;  %s34_s29 = sadd.s32 1, %s1285_s24 }
   0x9   : > { %p32_p0 = scmp.ge.s32.totalorder %s31_s28, 2  ;;  %p151_p1 = scmp.ne.s32.totalorder %s1269_s20, %s1265_s19 }
   0xa   : > { %p152_p2 = scmp.eq.s32.totalorder %s1068_s26, 3  ;;  %p157_p5 = scmp.ne.s32.totalorder %s1265_s19, %s1261_s18 }
   0xb   : > { %s1537_s28 = smov (%p32_p0, %s31_s28), 0  ;;  %s1539_s29 = smov (!%p32_p0, %s34_s29), %s1285_s24 }
   0xc   : > { %s137_s30 = ssub.s32 %s1281_s23, %s1537_s28  ;;  %p1372_p3 = por %p152_p2, %p151_p1 }
   0xd   : > { %p36_p4 = scmp.ge.s32.totalorder %s1539_s29, 2  ;;  %p158_p6 = scmp.eq.s32.totalorder %s1069_s27, 3 }
   0xe   : > { %p1072_p7 = scmp.ge.s32.totalorder %s1289_s25, 1  ;;  %p234_p9 = scmp.lt.s32.totalorder %s1289_s25, 5 }
   0xf   : > { %s1541_s29 = smov (%p36_p4, %s1539_s29), 0  ;;  %p1381_p8 = por %p158_p6, %p157_p5 }
  0x10   : > { %s136_s8 = ssub.s32 %s1285_s24, %s1541_s29  ;;  %s141_s9 = sadd.s32 1, %s1269_s20 }
  0x11   : > { %s138_s10 = sor.u32 %s137_s30, %s136_s8  ;;  %p235_p10 = pnand %p1072_p7, %p234_p9 }
  0x12   : > { %p139_p11 = scmp.eq.s32.totalorder %s138_s10, 0  ;;  %s1073_s14 = sshll.u32 (!%p235_p10), %s1273_s21, 1 }
  0x13   : > { %238 = sbr.rel (%p235_p10) target bundleno = 289 (0x121), region = 36  ;;  %p278_p12 = scmp.lt.s32.totalorder (!%p235_p10), %s1277_s22, 1 }
  0x14   : > { %s1390_s11 = scalar_select %p139_p11, %s1269_s20, %s141_s9  }
  0x15   : > { %p280_p13 = scmp.lt.s32.totalorder (!%p235_p10), %s1073_s14, 3  ;;  %p289_p0 = scmp.lt.s32.totalorder (!%p235_p10), %s1273_s21, 1 }
  0x18   : > { %v1078_v0 = vld [vmem:[%s1523_s2 + $0x4] sm:$0xf]  ;;  %vm324_vm0 = vcmask 1043456   ;;  %s279_s15 = scalar_select %p278_p12, %s1277_s22, 1  ;;  %v316_v3 = vld [vmem:[%s1523_s2] sm:$0xf] }
  0x19   : > { %v326_v1 = vsel %vm324_vm0, %v1078_v0, 0  ;;  %s1543_s14 = smov (!%p280_p13, %s1073_s14), 3  ;;  %v511_v4 = vsel %vm324_vm0, %v316_v3, 0  ;;  %vm319_vm1 = vcmask 31744   ;;  %vm300_vm2 = vcmask 1040384  }
  0x1a   : > { %v343_v2 = vand.u32 4294901760, %v326_v1  ;;  %s1074_s26 = sshll.u32 %s279_s15, 2  ;;  %v528_v6 = vand.u32 4294901760, %v511_v4  ;;  %s1076_s12 = sshll.u32 %s279_s15, 1  ;;  %v1079_v31 = vld [vmem:[%s1523_s2 + $0x8] sm:$0xf] }
  0x1b   : > { %s283_s27 = sadd.s32 %s1074_s26, %s1543_s14  ;;  %v698_v33 = vsel %vm324_vm0, %v1079_v31, 0  ;;  %vm307_vm3 = vcmask 1046528   ;;  %vm885_vm4 = vcmask 64512   ;;  %vm898_vm5 = vcmask 57344  }
  0x1c   : > { %1084 = vmatpush.msra.mxu2 %v343_v2  ;;  %v378_v5 = vsub.f32 %v326_v1, %v343_v2  ;;  %344 = vmatpush.msra.mxu0 %v343_v2  ;;  %s1075_s30 = sshll.u32 %s283_s27, 3  ;;  %v563_v8 = vsub.f32 %v511_v4, %v528_v6  ;;  %v715_v35 = vand.u32 4294901760, %v698_v33 }
  0x1d   : > { %s285_s10 = scalar_lea.vmem %s1521_s0, %s1075_s30 }
  0x1e   : > { %v379_v7 = vand.u32 4294901760, %v378_v5  ;;  %409 = vmatpush.msrb.mxu2 %v378_v5  ;;  %s290_s13 = scalar_select %p289_p0, %s1273_s21, 1  ;;  %v1408_v10 = vld [vmem:[%s285_s10 + $0x8] sm:$0xff]  ;;  %v1410_v11 = vld [vmem:[%s285_s10] sm:$0xff]  ;;  %v564_v12 = vand.u32 4294901760, %v563_v8  ;;  %v750_v37 = vsub.f32 %v698_v33, %v715_v35 }
  0x1f   : > { %v322_v13 = vsel %vm319_vm1, %v1408_v10, 0  ;;  %v320_v16 = vsel %vm319_vm1, %v1410_v11, 0  ;;  %v301_v23 = vrot.slane %v1410_v11, 7  ;;  %v302_v34 = vrot.slane %v1408_v10, 7  ;;  %s1080_s10 = sshll.u32 %s1277_s22, 1 }
  0x20   : > { %v380_v9 = vsub.f32 %v378_v5, %v379_v7  ;;  %469 = vmatpush.msrb.mxu0 %v379_v7  ;;  %s292_s14 = sadd.s32 %s1076_s12, %s290_s13  ;;  %v1414_v15 = vand.u32 4294901760, %v322_v13  ;;  %v345_v17 = vand.u32 4294901760, %v320_v16  ;;  %v565_v18 = vsub.f32 %v563_v8, %v564_v12  ;;  %s1452_s12 = sadd.s32 %s1273_s21, %s1080_s10 }
  0x21   : > { %s1077_s16 = sshll.u32 %s292_s14, 1  ;;  %v303_v38 = vsel %vm300_vm2, %v301_v23, %v302_v34  ;;  %v751_v39 = vand.u32 4294901760, %v750_v37  ;;  %v309_v44 = vrot.slane %v1408_v10, 1  ;;  %v308_v45 = vrot.slane %v1410_v11, 1  ;;  %s1455_s13 = sand.u32 1, %s1265_s19  }
  0x22   : > { %v381_v14 = vand.u32 4294901760, %v380_v9  ;;  %v354_v19 = vsub.f32 %v322_v13, %v1414_v15  ;;  %s1422_s26 = scalar_lea.vmem %s1522_s1, %s1077_s16  ;;  %v346_v20 = vsub.f32 %v320_v16, %v345_v17  ;;  %v566_v21 = vand.u32 4294901760, %v565_v18  ;;  %s927_s15 = scalar_lea.hbm %s1525_s4, %s1452_s12 }
  0x23   : > { %v297_v24 = vld [vmem:[%s1422_s26] sm:$0x1]  ;;  %v752_v41 = vsub.f32 %v750_v37, %v751_v39  ;;  %v508_v42 = vsel %vm319_vm1, %v303_v38, 0  ;;  %v310_v48 = vsel %vm307_vm3, %v308_v45, %v309_v44  ;;  %v306_v51 = vld [vmem:[%s1422_s26 + $0x1] sm:$0x1]  ;;  %s270_s17 = scalar_lea.vmem [#allocation2], %s1455_s13 }
  0x24   : > { %1085 = vmatpush.msra.mxu3 %v381_v14  ;;  %382 = vmatpush.msra.mxu1 %v381_v14  ;;  %v355_v22 = vand.u32 4294901760, %v354_v19  ;;  %v347_v25 = vand.u32 4294901760, %v346_v20  ;;  %v305_v29 = vsel %vm300_vm2, %v297_v24, %v301_v23  ;;  %v538_v47 = vand.u32 4294901760, %v508_v42  ;;  %s929_s26 = sshll.u32 %s270_s17, 4  ;;  %s931_s27 = sshll.u32 %s927_s15, 4  ;;  %s930_s26 = int_to_ptr.vmem [resolvable:$true] %s929_s26  ;;  %s932_s27 = int_to_ptr.hbm [resolvable:$true] %s931_s27 }
  0x25   : > { %388 = vmatmul.f32.vlgmr.msra.gmra.mxu3 %v1414_v15  ;;  %384 = vmatmul.f32.vlgmr.msra.gmra.mxu1 %v345_v17  ;;  %v506_v32 = vsel %vm319_vm1, %v305_v29, 0  ;;  %v753_v43 = vand.u32 4294901760, %v752_v41  ;;  %v692_v52 = vsel %vm319_vm1, %v310_v48, 0  ;;  %v313_v53 = vrot.slane %v306_v51, 1  ;;  %s913_s21 = scalar_lea.sflag [#allocation3], %s1455_s13  ;;  %s1177_s22 = sshra.s32 %s932_s27, 4  ;;  %s1178_s22 = int_to_ptr.hbm [resolvable:$true] %s1177_s22 }
  0x26   : > { %437 = vmatpush.msrb.mxu3 %v343_v2  ;;  %495 = vmatpush.msrb.mxu1 %v343_v2  ;;  %v356_v26 = vsub.f32 %v354_v19, %v355_v22  ;;  %v348_v27 = vsub.f32 %v346_v20, %v347_v25  ;;  %v530_v36 = vand.u32 4294901760, %v506_v32  ;;  %v539_v50 = vsub.f32 %v508_v42, %v538_v47  ;;  %s1179_s30 = scalar_lea.hbm %s1178_s22, 1  ;;  %s1183_s10 = scalar_lea.hbm %s1525_s4, 4 }
  0x27   : > { %v717_v56 = vand.u32 4294901760, %v692_v52  ;;  %v315_v57 = vsel %vm307_vm3, %v309_v44, %v313_v53  ;;  %p1180_p1 = scmp.ne.s32.totalorder %s1178_s22, %s1179_s30  ;;  %p1184_p5 = scmp.lt.s32.totalorder %s1178_s22, %s1525_s4 }
  0x28   : > { %567 = vmatpush.msra.mxu3 %v566_v21  ;;  %622 = vmatpush.msra.mxu1 %v528_v6  ;;  %v357_v28 = vand.u32 4294901760, %v356_v26  ;;  %v349_v30 = vand.u32 4294901760, %v348_v27  ;;  %v531_v40 = vsub.f32 %v506_v32, %v530_v36  ;;  %v540_v55 = vand.u32 4294901760, %v539_v50  ;;  %p1185_p6 = scmp.lt.s32.totalorder %s1183_s10, %s1179_s30 }
  0x29   : > { %v718_v59 = vsub.f32 %v692_v52, %v717_v56  ;;  %v695_v60 = vsel %vm319_vm1, %v315_v57, 0  ;;  %p1181_p2 = pnand %p1180_p1, %p1372_p3 }
  0x2a   : > { %358 = vmatmul.f32.vlgmr.msra.gmra.mxu2 %v357_v28  ;;  %350 = vmatmul.f32.vlgmr.msra.gmra.mxu0 %v349_v30  ;;  %v532_v46 = vand.u32 4294901760, %v531_v40  ;;  %v541_v58 = vsub.f32 %v539_v50, %v540_v55  ;;  %v725_v63 = vand.u32 4294901760, %v695_v60  ;;  %p1186_p7 = por %p1185_p6, %p1184_p5 }
  0x2b   : > { %529 = vmatpush.msra.mxu2 %v528_v6  ;;  %594 = vmatpush.msra.mxu0 %v563_v8  ;;  %v719_v62 = vand.u32 4294901760, %v718_v59  ;;  %p1182_p4 = pneg %p1181_p2 }
  0x2c   : > { %v533_v49 = vsub.f32 %v531_v40, %v532_v46  ;;  %v542_v61 = vand.u32 4294901760, %v541_v58  ;;  %v726_v1 = vsub.f32 %v695_v60, %v725_v63 }
  0x2d   : > { %441 = vmatmul.f32.vlgmr.msrb.gmra.mxu3 %v347_v25  ;;  %497 = vmatmul.f32.vlgmr.msrb.gmra.mxu1 %v345_v17  ;;  %v720_v0 = vsub.f32 %v718_v59, %v719_v62  ;;  %p1187_p9 = pnand %p1186_p7, %p1182_p4 }
  0x2e   : > { %680 = vmatpush.msrb.mxu3 %v528_v6  ;;  %754 = vmatpush.msrb.mxu1 %v753_v43  ;;  %v534_v54 = vand.u32 4294901760, %v533_v49  ;;  %v727_v3 = vand.u32 4294901760, %v726_v1 }
  0x2f   : > { %v721_v2 = vand.u32 4294901760, %v720_v0 }
  0x30   : > { %v728_v4 = vsub.f32 %v726_v1, %v727_v3 }
  0x32   : > { %412 = vmatmul.f32.vlgmr.msrb.gmra.mxu2 %v346_v20  ;;  %471 = vmatmul.f32.vlgmr.msrb.gmra.mxu0 %v345_v17  ;;  %v729_v5 = vand.u32 4294901760, %v728_v4 }
  0x33   : > { %654 = vmatpush.msrb.mxu2 %v564_v12  ;;  %716 = vmatpush.msrb.mxu0 %v715_v35 }
  0x35   : > { %447 = vmatmul.f32.gmra.mxu3 %v355_v22  ;;  %501 = vmatmul.f32.gmra.mxu1 %v1414_v15 }
  0x3a   : > { %417 = vmatmul.f32.gmra.mxu2 %v354_v19  ;;  %475 = vmatmul.f32.gmra.mxu0 %v1414_v15 }
  0x3d   : > { %569 = vmatmul.f32.vlgmr.msra.gmra.mxu3 %v530_v36  ;;  %626 = vmatmul.f32.vlgmr.msra.gmra.mxu1 %v532_v46 }
  0x3e   : > { %809 = vmatpush.msra.mxu3 %v715_v35  ;;  %867 = vmatpush.msra.mxu1 %v715_v35 }
  0x42   : > { %535 = vmatmul.f32.vlgmr.msra.gmra.mxu2 %v534_v54  ;;  %597 = vmatmul.f32.vlgmr.msra.gmra.mxu0 %v531_v40 }
  0x43   : > { %781 = vmatpush.msra.mxu2 %v750_v37  ;;  %841 = vmatpush.msra.mxu0 %v751_v39 }
  0x45   : > { %573 = vmatmul.f32.gmra.mxu3 %v538_v47  ;;  %632 = vmatmul.f32.gmra.mxu1 %v540_v55 }
  0x4a   : > { %543 = vmatmul.f32.gmra.mxu2 %v542_v61  ;;  %602 = vmatmul.f32.gmra.mxu0 %v539_v50 }
  0x4d   : > { %682 = vmatmul.f32.vlgmr.msrb.gmra.mxu3 %v530_v36  ;;  %756 = vmatmul.f32.vlgmr.msrb.gmra.mxu1 %v717_v56 }
  0x52   : > { %656 = vmatmul.f32.vlgmr.msrb.gmra.mxu2 %v530_v36  ;;  %722 = vmatmul.f32.vlgmr.msrb.gmra.mxu0 %v721_v2 }
  0x55   : > { %686 = vmatmul.f32.gmra.mxu3 %v538_v47  ;;  %760 = vmatmul.f32.gmra.mxu1 %v725_v63 }
  0x5a   : > { %660 = vmatmul.f32.gmra.mxu2 %v538_v47  ;;  %730 = vmatmul.f32.gmra.mxu0 %v729_v5 }
  0x5d   : > { %813 = vmatmul.f32.vlgmr.msra.gmra.mxu3 %v719_v62  ;;  %869 = vmatmul.f32.vlgmr.msra.gmra.mxu1 %v717_v56 }
  0x62   : > { %784 = vmatmul.f32.vlgmr.msra.gmra.mxu2 %v718_v59  ;;  %843 = vmatmul.f32.vlgmr.msra.gmra.mxu0 %v717_v56 }
  0x65   : > { %819 = vmatmul.f32.gmra.mxu3 %v727_v3  ;;  %873 = vmatmul.f32.gmra.mxu1 %v725_v63 }
  0x6a   : > { %789 = vmatmul.f32.gmra.mxu2 %v726_v1  ;;  %847 = vmatmul.f32.gmra.mxu0 %v725_v63 }
  0xa2   : > { %v385_v6 = vpop.f32.mrf.mxu1 }
  0xa7   : > { %v351_v8 = vpop.f32.mrf.mxu0 }
  0xa8   : > { %v389_v7 = vpop.f32.mrf.mxu3  ;;  %v386_v26 = vadd.f32 %v385_v6, %v351_v8  ;;  %v1162_v8 = vld [vmem:[%s1524_s3] ss:$0 sm:$0xff] }
  0xaa   : > { %v498_v10 = vpop.f32.mrf.mxu1 }
  0xad   : > { %v359_v9 = vpop.f32.mrf.mxu2 }
  0xae   : > { %v390_v30 = vadd.f32 %v389_v7, %v359_v9 }
  0xaf   : > { %v472_v12 = vpop.f32.mrf.mxu0 }
  0xb0   : > { %v442_v11 = vpop.f32.mrf.mxu3 }
  0xb2   : > { %v502_v15 = vpop.f32.mrf.mxu1 }
  0xb5   : > { %v413_v13 = vpop.f32.mrf.mxu2 }
  0xb6   : > { %v414_v28 = vadd.f32 %v413_v13, %v386_v26 }
  0xb7   : > { %v476_v16 = vpop.f32.mrf.mxu0 }
  0xb8   : > { %v448_v14 = vpop.f32.mrf.mxu3  ;;  %v443_v31 = vadd.f32 %v442_v11, %v414_v28 }
  0xba   : > { %v627_v20 = vpop.f32.mrf.mxu1  ;;  %v473_v35 = vadd.f32 %v472_v12, %v443_v31 }
  0xbc   : > { %v499_v39 = vadd.f32 %v498_v10, %v473_v35 }
  0xbd   : > { %v418_v17 = vpop.f32.mrf.mxu2 }
  0xbe   : > { %v419_v32 = vadd.f32 %v418_v17, %v390_v30 }
  0xbf   : > { %v598_v19 = vpop.f32.mrf.mxu0 }
  0xc0   : > { %v570_v18 = vpop.f32.mrf.mxu3  ;;  %v449_v36 = vadd.f32 %v448_v14, %v419_v32 }
  0xc2   : > { %v633_v24 = vpop.f32.mrf.mxu1  ;;  %v477_v40 = vadd.f32 %v476_v16, %v449_v36 }
  0xc4   : > { %v503_v44 = vadd.f32 %v502_v15, %v477_v40 }
  0xc5   : > { %v536_v21 = vpop.f32.mrf.mxu2 }
  0xc6   : > { %v537_v42 = vadd.f32 %v536_v21, %v499_v39 }
  0xc7   : > { %v603_v23 = vpop.f32.mrf.mxu0 }
  0xc8   : > { %v574_v22 = vpop.f32.mrf.mxu3  ;;  %v571_v45 = vadd.f32 %v570_v18, %v537_v42 }
  0xca   : > { %v757_v34 = vpop.f32.mrf.mxu1  ;;  %v599_v51 = vadd.f32 %v598_v19, %v571_v45 }
  0xcc   : > { %v628_v56 = vadd.f32 %v627_v20, %v599_v51 }
  0xcd   : > { %v544_v25 = vpop.f32.mrf.mxu2 }
  0xce   : > { %v545_v46 = vadd.f32 %v544_v25, %v503_v44 }
  0xcf   : > { %v723_v29 = vpop.f32.mrf.mxu0 }
  0xd0   : > { %v683_v27 = vpop.f32.mrf.mxu3  ;;  %v758_v48 = vadd.f32 %v757_v34, %v723_v29  ;;  %v575_v52 = vadd.f32 %v574_v22, %v545_v46 }
  0xd2   : > { %v761_v43 = vpop.f32.mrf.mxu1  ;;  %v604_v57 = vadd.f32 %v603_v23, %v575_v52 }
  0xd4   : > { %v634_v63 = vadd.f32 %v633_v24, %v604_v57 }
  0xd5   : > { %v657_v33 = vpop.f32.mrf.mxu2 }
  0xd6   : > { %v658_v59 = vadd.f32 %v657_v33, %v628_v56 }
  0xd7   : > { %v731_v38 = vpop.f32.mrf.mxu0 }
  0xd8   : > { %v687_v37 = vpop.f32.mrf.mxu3  ;;  %v762_v60 = vadd.f32 %v761_v43, %v731_v38  ;;  %v684_v3 = vadd.f32 %v683_v27, %v658_v59 }
  0xda   : > { %v870_v54 = vpop.f32.mrf.mxu1 }
  0xdd   : > { %v661_v41 = vpop.f32.mrf.mxu2 }
  0xde   : > { %v662_v4 = vadd.f32 %v661_v41, %v634_v63 }
  0xdf   : > { %v844_v50 = vpop.f32.mrf.mxu0 }
  0xe0   : > { %v814_v47 = vpop.f32.mrf.mxu3  ;;  %v688_v10 = vadd.f32 %v687_v37, %v662_v4 }
  0xe2   : > { %v874_v6 = vpop.f32.mrf.mxu1 }
  0xe5   : > { %v785_v49 = vpop.f32.mrf.mxu2 }
  0xe6   : > { %v786_v53 = vadd.f32 %v785_v49, %v758_v48 }
  0xe7   : > { %v848_v2 = vpop.f32.mrf.mxu0 }
  0xe8   : > { %v815_v55 = vadd.f32 %v814_v47, %v786_v53  ;;  %v820_v62 = vpop.f32.mrf.mxu3 }
  0xea   : > { %v845_v58 = vadd.f32 %v844_v50, %v815_v55 }
  0xec   : > { %v871_v0 = vadd.f32 %v870_v54, %v845_v58 }
  0xed   : > { %v790_v61 = vpop.f32.mrf.mxu2 }
  0xee   : > { %v791_v1 = vadd.f32 %v790_v61, %v762_v60  ;;  %v877_v7 = vadd.f32 %v871_v0, %v684_v3 }
  0xf0   : > { %v821_v5 = vadd.f32 %v820_v62, %v791_v1  ;;  %v883_v12 = vadd.f32 %v1162_v8, %v877_v7 }
  0xf2   : > { %v849_v9 = vadd.f32 %v848_v2, %v821_v5  ;;  %v886_v15 = vsel %vm885_vm4, %v883_v12, 0.0 }
  0xf4   : > { %v875_v11 = vadd.f32 %v874_v6, %v849_v9 }
  0xf6   : > { %v878_v13 = vadd.f32 %v875_v11, %v688_v10 }
  0xf8   : > { %v884_v14 = vadd.f32 %v1162_v8, %v878_v13 }
  0xfa   : > { %v887_v16 = vsel %vm885_vm4, %v884_v14, 0.0 }
  0xfb   : > { %v888_v17 = vadd.f32 %v887_v16, %v886_v15 }
  0xfd   : > { %v889_v18 = vrot.slane %v888_v17, 4 }
  0xff   : > { %v890_v19 = vadd.f32 %v889_v18, %v888_v17 }
 0x101   : > { %v891_v20 = vrot.slane %v890_v19, 2 }
 0x103   : > { %v892_v21 = vadd.f32 %v891_v20, %v890_v19 }
 0x105   : > { %v893_v22 = vrot.slane %v892_v21, 1 }
 0x107   : > { %v894_v23 = vadd.f32 %v893_v22, %v892_v21 }
 0x109   : > { %v895_v24 = vmul.f32 0.0625, %v894_v23  ;;  %899 = vst.msk [vmem:[%s270_s17] sm:$0x1] %vm898_vm5, %v894_v23 }
 0x10a   : > { %1190 = shalt.err (!%p1187_p9)
}
 0x10b   : > { %1086 = dma.vmem_to_hbm [thread:$0]  (%p1372_p3), %s930_s26, 16, %s932_s27, %s913_s21   ;;  %v896_v25 = vsub.f32 %v883_v12, %v895_v24  ;;  %v897_v26 = vsub.f32 %v884_v14, %v895_v24 }
 0x10c   : > { %s942_s22 = scalar_lea.hbm %s1526_s5, %s1452_s12  ;;  %s276_s26 = scalar_lea.vmem [#allocation4], %s1455_s13 }
 0x10d   : > { %v900_v27 = vmul.f32 %v896_v25, %v896_v25  ;;  %v901_v28 = vmul.f32 %v897_v26, %v897_v26  ;;  %s944_s27 = sshll.u32 %s276_s26, 4  ;;  %s946_s21 = sshll.u32 %s942_s22, 4  ;;  %s945_s27 = int_to_ptr.vmem [resolvable:$true] %s944_s27  ;;  %s947_s21 = int_to_ptr.hbm [resolvable:$true] %s946_s21 }
 0x10e   : > { %s917_s30 = scalar_lea.sflag [#allocation5], %s1455_s13  ;;  %s1205_s8 = sshra.s32 %s947_s21, 4  ;;  %s1206_s8 = int_to_ptr.hbm [resolvable:$true] %s1205_s8 }
 0x10f   : > { %v902_v29 = vsel %vm885_vm4, %v900_v27, 0.0  ;;  %v903_v30 = vsel %vm885_vm4, %v901_v28, 0.0  ;;  %s1207_s9 = scalar_lea.hbm %s1206_s8, 1  ;;  %s1211_s14 = scalar_lea.hbm %s1526_s5, 4 }
 0x110   : > { %v904_v31 = vadd.f32 %v903_v30, %v902_v29  ;;  %p1208_p10 = scmp.ne.s32.totalorder %s1206_s8, %s1207_s9  ;;  %p1212_p13 = scmp.lt.s32.totalorder %s1206_s8, %s1526_s5 }
 0x111   : > { %p1213_p0 = scmp.lt.s32.totalorder %s1211_s14, %s1207_s9 }
 0x112   : > { %v905_v32 = vrot.slane %v904_v31, 4  ;;  %p1209_p11 = pnand %p1208_p10, %p1372_p3 }
 0x113   : > { %p1214_p1 = por %p1213_p0, %p1212_p13 }
 0x114   : > { %v906_v33 = vadd.f32 %v905_v32, %v904_v31  ;;  %p1210_p12 = pneg %p1209_p11 }
 0x116   : > { %v907_v34 = vrot.slane %v906_v33, 2  ;;  %p1215_p2 = pnand %p1214_p1, %p1210_p12 }
 0x118   : > { %v908_v35 = vadd.f32 %v907_v34, %v906_v33 }
 0x11a   : > { %v909_v36 = vrot.slane %v908_v35, 1 }
 0x11c   : > { %v910_v37 = vadd.f32 %v909_v36, %v908_v35 }
 0x11e   : > { %911 = vst.msk [vmem:[%s276_s26] sm:$0x1] %vm898_vm5, %v910_v37 }
 0x11f   : > { %1218 = shalt.err (!%p1215_p2)
}
 0x120   : > { %1087 = dma.vmem_to_hbm [thread:$0]  (%p1372_p3), %s945_s27, 16, %s947_s21, %s917_s30  }
 0x121 PF: > { %p1097_p4 = scmp.ge.s32.totalorder %s1289_s25, 2  ;;  %s958_s13 = sand.u32 1, %s1261_s18  }
 0x122   : > { %s959_s17 = scalar_lea.sflag [#allocation3], %s958_s13 }
 0x123   : > { %p1091_p5 = pnand %p1097_p4, %p1381_p8 }
 0x125   : > { %p1092_p6 = pneg %p1091_p5 }
 0x127   : > { %1252 = dma.done.wait (%p1092_p6), %s959_s17, 16  }
 0x128   : > { %1254 = vsyncadd (%p1092_p6), %s959_s17, 4294967280  ;;  %s968_s22 = scalar_lea.sflag [#allocation5], %s958_s13 }
 0x129   : > { %1256 = dma.done.wait (%p1092_p6), %s968_s22, 16  }
 0x12a   : > { %1258 = vsyncadd (%p1092_p6), %s968_s22, 4294967280  ;;  %s22_s25 = sadd.s32 1, %s1289_s25   ;;  %s1529_s18 = smov %s1265_s19 }
 0x12b   : > { %p19_p7 = scmp.ge.s32.totalorder %s22_s25, 6   ;;  %s1530_s19 = smov %s1269_s20 }
 0x12c   : > { %s1531_s20 = smov %s1390_s11  ;;  %s1532_s21 = smov %s1281_s23 }
 0x12d   : > { %s1533_s22 = smov %s1285_s24  ;;  %s1534_s23 = smov %s1537_s28 }
 0x12e   : > { %s1535_s24 = smov %s1541_s29  ;;  %21 = sbr.rel (!%p19_p7) target bundleno = 7 (0x7), region = 93 }
 0x133   :  { %973 = vsyncpa [#allocation3], 1 }
 0x134   :  { %975 = vsyncpa [#allocation3 + $0x1], 1 }
 0x135   :  { %976 = vsyncpa [#allocation5], 1 }
 0x136   :  { %978 = vsyncpa [#allocation5 + $0x1], 1 }

</bundles_post_ra>
